<compile_context>
chip_gen: v7x
topology: tpu7x:2x2x1
jax: 0.10.0
libtpu: 0.0.40
codegen_flags: <defaults>
</compile_context>

<pallas_src>
import functools

import numpy as np
import jax
import jax.numpy as jnp
from jax.experimental import pallas as pl
from jax.experimental.pallas import tpu as pltpu

NEG_INF = -1e30


def _round_up(x, m):
    return (x + m - 1) // m * m


def _bf16_round(a):
    return np.asarray(jnp.asarray(a, jnp.bfloat16).astype(jnp.float32))


# ---------------------------------------------------------------------------
# Pallas kernel: Self_Attention pooling for a block of TAA amino acids.
# ---------------------------------------------------------------------------
def sap_pool_kernel(aa_ref, h_ref, len_ref, w1_ref, b1_ref, w2_ref, b2_ref, o_ref,
                    *, seg, n_heads, elem_dtype, skip_max_sub):
    # aa_ref : (TAA, D)       f32   per-aa features (copied to output[:, :D])
    # h_ref  : (TAA*S, D)     bf16  flat, segment-major padded atom features
    # len_ref: (TAA, 1)       i32   valid-atom count per aa
    # w1_ref : (D, D2) bf16        b1_ref: (1, D2) f32
    # w2_ref : (D2, H) bf16        b2_ref: (1, H)  f32
    # o_ref  : (TAA, 2*D)     f32   [aa_features | attention-pooled atom features]
    TAA = aa_ref.shape[0]
    S = seg
    D = h_ref.shape[1]
    H = w2_ref.shape[1]

    h_flat = h_ref[...]                                     # (TAA*S, D) bf16, no reshape

    # fc1 + tanh.  Elementwise/transcendental dtype: bf16 on v6e/v7x, f32 on v5e.
    x = jnp.dot(h_flat, w1_ref[...], preferred_element_type=jnp.float32) + b1_ref[...]
    x = jnp.tanh(x.astype(elem_dtype))

    # fc2 -> per-head scores, flat (TAA*S, H) f32, then view as (TAA, S, H)
    # (f32 reshape with S == 8 is a layout no-op).
    s = jnp.dot(x.astype(w2_ref.dtype), w2_ref[...],
                preferred_element_type=jnp.float32) + b2_ref[...]
    s3 = s.reshape(TAA, S, H)

    # Mask padded atom positions (built in-kernel from per-aa lengths).
    pos = jax.lax.broadcasted_iota(jnp.int32, (TAA, S, 1), 1)
    valid = pos < len_ref[...].reshape(TAA, 1, 1)           # (TAA, S, 1)

    # Softmax over the atom axis (axis=1), independently per head (f32).
    if skip_max_sub:
        # |s| <= ||w2||_1 + |b2| < 80 (asserted host-side) -> exp cannot overflow.
        p = jnp.where(valid, jnp.exp(s3), 0.0)
    else:
        s3 = jnp.where(valid, s3, NEG_INF)
        p = jnp.exp(s3 - jnp.max(s3, axis=1, keepdims=True))
        p = jnp.where(valid, p, 0.0)
    denom = jnp.sum(p, axis=1, keepdims=True)               # (TAA, 1, H)
    # Fold the 1/H head-mean into the approximate reciprocal (EUP slot, ~free).
    inv = pl.reciprocal(denom * n_heads, approx=True)

    # mean_h(att_h @ h) == (mean_h att_h) @ h : one pooled contraction over S.
    att_w = jnp.sum(p * inv, axis=2, keepdims=True)         # (TAA, S, 1) f32
    att_flat = att_w.reshape(TAA * S, 1)                     # f32, sublane-major: no-op
    prod = att_flat * h_flat                                  # promotes bf16 h -> f32
    pooled = jnp.sum(prod.reshape(TAA, S, D), axis=1)        # (TAA, D) f32

    # Fused concatenation -> single lane-denser store.
    o_ref[...] = jnp.concatenate(
        [aa_ref[...], pooled], axis=-1).astype(o_ref.dtype)


def sap_pool(aa, h_flat, lengths, w1, b1, w2, b2, *, seg, n_heads, skip_max_sub,
             taa=None, vmem_limit_bytes=32 * 1024 * 1024):
    A, D = aa.shape
    D2 = w1.shape[1]
    H = w2.shape[1]
    assert h_flat.shape == (A * seg, D)
    assert lengths.shape == (A, 1)

    kind = jax.devices()[0].device_kind.lower()
    is_v5 = "v5" in kind
    elem_dtype = jnp.float32 if is_v5 else jnp.bfloat16      # no bf16 VPU/EUP on v5e

    if taa is None:
        taa = 128 if is_v5 else 256
    # Keep the grid at >=2 steps so the "parallel" axis can be split across
    # TensorCores (v7x megacore); also keep taa a multiple of 8.
    taa = max(8, min(taa, _round_up(max(pl.cdiv(A, 2), 1), 8)))

    kernel = functools.partial(
        sap_pool_kernel, seg=seg, n_heads=n_heads,
        elem_dtype=elem_dtype, skip_max_sub=skip_max_sub)

    # No host-side padding: cdiv grid, Pallas masks the out-of-bounds tail block.
    grid = (pl.cdiv(A, taa),)
    out = pl.pallas_call(
        kernel,
        out_shape=jax.ShapeDtypeStruct((A, 2 * D), jnp.float32),
        grid=grid,
        in_specs=[
            pl.BlockSpec((taa, D), lambda i: (i, 0)),              # aa features
            pl.BlockSpec((taa * seg, D), lambda i: (i, 0)),        # flat atom features
            pl.BlockSpec((taa, 1), lambda i: (i, 0)),              # segment lengths
            pl.BlockSpec((D, D2), lambda i: (0, 0)),               # w1
            pl.BlockSpec((1, D2), lambda i: (0, 0)),               # b1
            pl.BlockSpec((D2, H), lambda i: (0, 0)),               # w2
            pl.BlockSpec((1, H), lambda i: (0, 0)),                # b2
        ],
        out_specs=pl.BlockSpec((taa, 2 * D), lambda i: (i, 0)),
        compiler_params=pltpu.CompilerParams(
            dimension_semantics=("parallel",),
            vmem_limit_bytes=vmem_limit_bytes),
    )(aa, h_flat, lengths, w1, b1, w2, b2)
    return out


# ---------------------------------------------------------------------------
# Host-side glue replicating GMM.forward's irregular index bookkeeping.
# ---------------------------------------------------------------------------
def flatten_atom_nums(atom_nums):
    """Replicates the reference flattening / global-offset logic (numpy glue)."""
    flat = [a.copy() for i in atom_nums for a in i]
    ind = flat[0][-1][-1] + 1
    for i in range(1, len(flat)):
        flat[i] = flat[i] + ind
        ind = flat[i][-1][-1] + 1
    return np.concatenate(flat)                 # (aa_cnt, 2) absolute [start, end]


def gmm_forward(aa_gmms, atom_gmms, atom_nums, params, num_heads,
                *, max_seg=8, taa=None):
    aa_gmms = jnp.asarray(aa_gmms, jnp.float32)
    atom_gmms = jnp.asarray(atom_gmms, jnp.float32)

    # Reference count checks.
    aa_cnt, atom_cnt = 0, 0
    for i in range(len(atom_nums)):
        for j in range(len(atom_nums[i])):
            aa_cnt += atom_nums[i][j].shape[0]
            atom_cnt += atom_nums[i][j][-1][-1] + 1
    assert aa_cnt == aa_gmms.shape[0]
    assert atom_cnt == atom_gmms.shape[0]

    atom_nums_cat = flatten_atom_nums(atom_nums)
    assert atom_nums_cat[-1][1] + 1 == atom_gmms.shape[0]

    starts = atom_nums_cat[:, 0]
    lengths = atom_nums_cat[:, 1] - atom_nums_cat[:, 0] + 1
    assert int(lengths.max()) <= max_seg

    # TODO(synk): the ragged per-amino-acid gather is done host-side into a flat
    # (A*S, D) slab; an in-kernel scalar-prefetch + make_async_copy gather from
    # atom_gmms (memory_space=pl.ANY) would remove this extra HBM round trip.
    pos = np.arange(max_seg)[None, :]
    valid = pos < lengths[:, None]                                   # (A, S)
    idx = np.where(valid, starts[:, None] + pos, 0).reshape(-1)      # (A*S,)
    h_flat = atom_gmms[jnp.asarray(idx, jnp.int32)].astype(jnp.bfloat16)  # (A*S, D)
    len_arr = jnp.asarray(lengths[:, None], jnp.int32)                    # (A, 1)

    w1, b1, w2, b2 = params
    assert w2.shape[1] == num_heads

    # Since x = tanh(.) is in [-1, 1], |score| <= max_h(||w2[:,h]||_1 + |b2[h]|).
    # If that bound is comfortably below the f32 exp overflow threshold we can
    # drop the softmax max-subtraction inside the kernel.
    w2_np = np.asarray(w2, np.float32)
    b2_np = np.asarray(b2, np.float32)
    score_bound = float(np.abs(w2_np).sum(axis=0).max() + np.abs(b2_np).max())
    skip_max_sub = score_bound < 80.0

    w1 = jnp.asarray(w1, jnp.bfloat16)
    w2 = jnp.asarray(w2, jnp.bfloat16)
    b1 = jnp.asarray(b1, jnp.float32)
    b2 = jnp.asarray(b2, jnp.float32)

    # Kernel writes [aa_gmms | pooled] directly -> (A, 2*D).
    return sap_pool(aa_gmms, h_flat, len_arr, w1, b1, w2, b2,
                    seg=max_seg, n_heads=num_heads,
                    skip_max_sub=skip_max_sub, taa=taa)


# ---------------------------------------------------------------------------
# Pure numpy reference (mirrors the PyTorch code) for verification.
# ---------------------------------------------------------------------------
def sap_ref(h, w1, b1, w2, b2, n_heads):
    x = np.tanh(h @ w1 + b1[0])
    # The kernel feeds a bf16 x into the fc2 MXU matmul; mirror that intentional
    # quantization so the comparison isolates kernel semantics.
    x = _bf16_round(x)
    x = x @ w2 + b2[0]
    x = x.T                                          # (H, n)
    x = x - x.max(axis=1, keepdims=True)
    e = np.exp(x)
    att = e / e.sum(axis=1, keepdims=True)
    out = att @ h                                    # (H, D)
    return out.sum(axis=0, keepdims=True) / n_heads


def gmm_ref(aa_gmms, atom_gmms, atom_nums, w1, b1, w2, b2, n_heads):
    cat = flatten_atom_nums(atom_nums)
    pooled = [sap_ref(atom_gmms[s:e + 1], w1, b1, w2, b2, n_heads)
              for s, e in cat]
    pooled = np.concatenate(pooled, 0)
    return np.concatenate([aa_gmms, pooled], 1)


# ---------------------------------------------------------------------------
if __name__ == "__main__":
    key = jax.random.PRNGKey(0)
    in_dim = 32                       # in_dim_gmm
    num_heads = 4
    max_seg = 8
    d2 = in_dim // 2

    # Two "chains", 8 amino acids each; hardcoded atoms-per-aa (all <= max_seg).
    lens_per_chain = [[3, 5, 8, 4, 6, 7, 2, 8], [4, 8, 3, 5, 6, 2, 7, 8]]
    atom_nums = []
    for lens in lens_per_chain:
        ends = np.cumsum(lens) - 1
        starts = ends - np.asarray(lens) + 1
        atom_nums.append([np.stack([starts, ends], axis=1).astype(np.int64)])
    aa_cnt = sum(len(l) for l in lens_per_chain)          # 16
    atom_cnt = sum(sum(l) for l in lens_per_chain)        # 86

    k1, k2, k3, k4, k5, k6 = jax.random.split(key, 6)
    aa_gmms = jax.random.normal(k1, (aa_cnt, in_dim), jnp.float32)
    atom_gmms = jax.random.normal(k2, (atom_cnt, in_dim), jnp.float32)
    # Deterministic synthetic Linear parameters (stored as [in, out]).
    w1 = jax.random.normal(k3, (in_dim, d2), jnp.float32) * 0.2
    b1 = jax.random.normal(k4, (1, d2), jnp.float32) * 0.1
    w2 = jax.random.normal(k5, (d2, num_heads), jnp.float32) * 0.2
    b2 = jax.random.normal(k6, (1, num_heads), jnp.float32) * 0.1

    # taa=8 here only so the tiny 16-aa test exercises a multi-step grid;
    # production default is 128 (v5e) / 256 (v6e, v7x) with a >=2-step clamp.
    out = gmm_forward(aa_gmms, atom_gmms, atom_nums, (w1, b1, w2, b2),
                      num_heads, max_seg=max_seg, taa=8)
    out = jax.block_until_ready(out)

    # Reference uses bf16-rounded matmul operands (same as the kernel) so the
    # comparison isolates kernel semantics from the intentional bf16 quantization.
    ref = gmm_ref(np.asarray(aa_gmms), _bf16_round(atom_gmms), atom_nums,
                  _bf16_round(w1), np.asarray(b1), _bf16_round(w2),
                  np.asarray(b2), num_heads)

    assert out.shape == (aa_cnt, 2 * in_dim), out.shape
    np.testing.assert_allclose(np.asarray(out), ref, rtol=2e-2, atol=2e-2)
    print("KERNEL_OK")
</pallas_src>

<mosaic_0001>
module attributes {stable_mosaic.version = 11 : i64} {
  func.func @sap_pool_kernel(%arg0: i32, %arg1: memref<8x32xf32, #tpu.memory_space<vmem>>, %arg2: memref<64x32xbf16, #tpu.memory_space<vmem>>, %arg3: memref<8x1xi32, #tpu.memory_space<vmem>>, %arg4: memref<32x16xbf16, #tpu.memory_space<vmem>>, %arg5: memref<1x16xf32, #tpu.memory_space<vmem>>, %arg6: memref<16x4xbf16, #tpu.memory_space<vmem>>, %arg7: memref<1x4xf32, #tpu.memory_space<vmem>>, %arg8: memref<8x64xf32, #tpu.memory_space<vmem>>) attributes {dimension_semantics = [#tpu.dimension_semantics<parallel>], iteration_bounds = array<i64: 2>, scalar_prefetch = 0 : i64, scratch_operands = 0 : i64, tpu.core_type = #tpu.core_type<tc>, window_params = [{transform_indices = @transform_0, window_bounds = array<i64: 8, 32>}, {transform_indices = @transform_1, window_bounds = array<i64: 64, 32>}, {transform_indices = @transform_2, window_bounds = array<i64: 8, 1>}, {pipeline_mode = #tpu.pipeline_mode<synchronous>, transform_indices = @transform_3, window_bounds = array<i64: 32, 16>}, {pipeline_mode = #tpu.pipeline_mode<synchronous>, transform_indices = @transform_4, window_bounds = array<i64: 1, 16>}, {pipeline_mode = #tpu.pipeline_mode<synchronous>, transform_indices = @transform_5, window_bounds = array<i64: 16, 4>}, {pipeline_mode = #tpu.pipeline_mode<synchronous>, transform_indices = @transform_6, window_bounds = array<i64: 1, 4>}, {transform_indices = @transform_7, window_bounds = array<i64: 8, 64>}]} {
    %c0 = arith.constant 0 : index
    %c0_0 = arith.constant 0 : index
    %0 = vector.load %arg2[%c0, %c0_0] : memref<64x32xbf16, #tpu.memory_space<vmem>>, vector<64x32xbf16>
    %c0_1 = arith.constant 0 : index
    %c0_2 = arith.constant 0 : index
    %1 = vector.load %arg4[%c0_1, %c0_2] : memref<32x16xbf16, #tpu.memory_space<vmem>>, vector<32x16xbf16>
    %cst = arith.constant dense<0.000000e+00> : vector<64x16xf32>
    %2 = tpu.matmul %0, %1, %cst {dimension_numbers = #tpu.dot_dimension_numbers<[1], [0], [0], [1], [0, 0, 1, 1], [], []>} : vector<64x32xbf16>, vector<32x16xbf16>, vector<64x16xf32> -> vector<64x16xf32>
    %c0_3 = arith.constant 0 : index
    %c0_4 = arith.constant 0 : index
    %3 = vector.load %arg5[%c0_3, %c0_4] : memref<1x16xf32, #tpu.memory_space<vmem>>, vector<1x16xf32>
    %4 = vector.broadcast %3 : vector<1x16xf32> to vector<64x16xf32>
    %5 = arith.addf %2, %4 : vector<64x16xf32>
    %6 = arith.truncf %5 : vector<64x16xf32> to vector<64x16xbf16>
    %7 = math.tanh %6 : vector<64x16xbf16>
    %c0_5 = arith.constant 0 : index
    %c0_6 = arith.constant 0 : index
    %8 = vector.load %arg6[%c0_5, %c0_6] : memref<16x4xbf16, #tpu.memory_space<vmem>>, vector<16x4xbf16>
    %cst_7 = arith.constant dense<0.000000e+00> : vector<64x4xf32>
    %9 = tpu.matmul %7, %8, %cst_7 {dimension_numbers = #tpu.dot_dimension_numbers<[1], [0], [0], [1], [0, 0, 1, 1], [], []>} : vector<64x16xbf16>, vector<16x4xbf16>, vector<64x4xf32> -> vector<64x4xf32>
    %c0_8 = arith.constant 0 : index
    %c0_9 = arith.constant 0 : index
    %10 = vector.load %arg7[%c0_8, %c0_9] : memref<1x4xf32, #tpu.memory_space<vmem>>, vector<1x4xf32>
    %11 = vector.broadcast %10 : vector<1x4xf32> to vector<64x4xf32>
    %12 = arith.addf %9, %11 : vector<64x4xf32>
    %13 = vector.shape_cast %12 : vector<64x4xf32> to vector<8x8x4xf32>
    %14 = tpu.iota {dimensions = array<i32: 1>} : vector<8x8x1xi32>
    %c0_10 = arith.constant 0 : index
    %c0_11 = arith.constant 0 : index
    %15 = vector.load %arg3[%c0_10, %c0_11] : memref<8x1xi32, #tpu.memory_space<vmem>>, vector<8x1xi32>
    %16 = vector.shape_cast %15 : vector<8x1xi32> to vector<8x1x1xi32>
    %17 = vector.broadcast %16 : vector<8x1x1xi32> to vector<8x8x1xi32>
    %18 = arith.cmpi slt, %14, %17 : vector<8x8x1xi32>
    %19 = math.exp %13 : vector<8x8x4xf32>
    %cst_12 = arith.constant 0.000000e+00 : f32
    %20 = vector.shape_cast %18 : vector<8x8x1xi1> to vector<8x8x1xi1>
    %21 = vector.broadcast %20 : vector<8x8x1xi1> to vector<8x8x4xi1>
    %22 = vector.broadcast %cst_12 : f32 to vector<8x8x4xf32>
    %23 = arith.select %21, %19, %22 : vector<8x8x4xi1>, vector<8x8x4xf32>
    %cst_13 = arith.constant dense<0.000000e+00> : vector<8x4xf32>
    %24 = vector.multi_reduction <add>, %23, %cst_13 [1] : vector<8x8x4xf32> to vector<8x4xf32>
    %25 = vector.shape_cast %24 : vector<8x4xf32> to vector<8x1x4xf32>
    %cst_14 = arith.constant 4.000000e+00 : f32
    %26 = vector.broadcast %cst_14 : f32 to vector<8x1x4xf32>
    %27 = arith.mulf %25, %26 : vector<8x1x4xf32>
    %28 = tpu.reciprocal %27 {approx = true} : vector<8x1x4xf32> -> vector<8x1x4xf32>
    %29 = vector.broadcast %28 : vector<8x1x4xf32> to vector<8x8x4xf32>
    %30 = arith.mulf %23, %29 : vector<8x8x4xf32>
    %cst_15 = arith.constant dense<0.000000e+00> : vector<8x8xf32>
    %31 = vector.multi_reduction <add>, %30, %cst_15 [2] : vector<8x8x4xf32> to vector<8x8xf32>
    %32 = vector.shape_cast %31 : vector<8x8xf32> to vector<8x8x1xf32>
    %33 = vector.shape_cast %32 : vector<8x8x1xf32> to vector<64x1xf32>
    %34 = arith.extf %0 : vector<64x32xbf16> to vector<64x32xf32>
    %35 = vector.broadcast %33 : vector<64x1xf32> to vector<64x32xf32>
    %36 = arith.mulf %35, %34 : vector<64x32xf32>
    %37 = vector.shape_cast %36 : vector<64x32xf32> to vector<8x8x32xf32>
    %cst_16 = arith.constant dense<0.000000e+00> : vector<8x32xf32>
    %38 = vector.multi_reduction <add>, %37, %cst_16 [1] : vector<8x8x32xf32> to vector<8x32xf32>
    %c0_17 = arith.constant 0 : index
    %c0_18 = arith.constant 0 : index
    %39 = vector.load %arg1[%c0_17, %c0_18] : memref<8x32xf32, #tpu.memory_space<vmem>>, vector<8x32xf32>
    %40 = tpu.concatenate %39, %38 in 1 : vector<8x32xf32>, vector<8x32xf32> -> vector<8x64xf32>
    %c0_19 = arith.constant 0 : index
    %c0_20 = arith.constant 0 : index
    %41 = vector.load %arg8[%c0_19, %c0_20] : memref<8x64xf32, #tpu.memory_space<vmem>>, vector<8x64xf32>
    tpu.vector_store %arg8[%c0_19, %c0_20], %40 {strides = array<i32>} : memref<8x64xf32, #tpu.memory_space<vmem>>, vector<8x64xf32>,
    return
  }
  func.func @transform_0(%arg0: i32) -> (i32, i32) {
    %c0_i32 = arith.constant 0 : i32
    %c0_i32_0 = arith.constant 0 : i32
    return %arg0, %c0_i32 : i32, i32
  }
  func.func @transform_1(%arg0: i32) -> (i32, i32) {
    %c0_i32 = arith.constant 0 : i32
    %c0_i32_0 = arith.constant 0 : i32
    return %arg0, %c0_i32 : i32, i32
  }
  func.func @transform_2(%arg0: i32) -> (i32, i32) {
    %c0_i32 = arith.constant 0 : i32
    %c0_i32_0 = arith.constant 0 : i32
    return %arg0, %c0_i32 : i32, i32
  }
  func.func @transform_3(%arg0: i32) -> (i32, i32) {
    %c0_i32 = arith.constant 0 : i32
    %c0_i32_0 = arith.constant 0 : i32
    %c0_i32_1 = arith.constant 0 : i32
    return %c0_i32, %c0_i32_0 : i32, i32
  }
  func.func @transform_4(%arg0: i32) -> (i32, i32) {
    %c0_i32 = arith.constant 0 : i32
    %c0_i32_0 = arith.constant 0 : i32
    %c0_i32_1 = arith.constant 0 : i32
    return %c0_i32, %c0_i32_0 : i32, i32
  }
  func.func @transform_5(%arg0: i32) -> (i32, i32) {
    %c0_i32 = arith.constant 0 : i32
    %c0_i32_0 = arith.constant 0 : i32
    %c0_i32_1 = arith.constant 0 : i32
    return %c0_i32, %c0_i32_0 : i32, i32
  }
  func.func @transform_6(%arg0: i32) -> (i32, i32) {
    %c0_i32 = arith.constant 0 : i32
    %c0_i32_0 = arith.constant 0 : i32
    %c0_i32_1 = arith.constant 0 : i32
    return %c0_i32, %c0_i32_0 : i32, i32
  }
  func.func @transform_7(%arg0: i32) -> (i32, i32) {
    %c0_i32 = arith.constant 0 : i32
    %c0_i32_0 = arith.constant 0 : i32
    return %arg0, %c0_i32 : i32, i32
  }
}

</mosaic_0001>

<bundles_post_ra>
// kernel: tpu_custom_call.1
= control target key start
LH: loop header
LB: loop body
LE: loop exit
PB: predicated region body
PF: predicated region fallthrough
CT: control target
= control target key end

     0   :  { %12 = vsyncpa [#allocation3], 0  ;;  %s1482_s0 = inlined_call_operand.vmem [shape: f32[16,32], index: 0, kind: input, shape index: {}]   ;;  %s1483_s1 = inlined_call_operand.vmem [shape: bf16[128,32], index: 1, kind: input, shape index: {}]   ;;  %s1484_s2 = inlined_call_operand.vmem [shape: s32[16,1], index: 2, kind: input, shape index: {}]   ;;  %s1485_s3 = inlined_call_operand.vmem [shape: bf16[32,16], index: 3, kind: input, shape index: {}]   ;;  %s1486_s4 = inlined_call_operand.vmem [shape: f32[1,16], index: 4, kind: input, shape index: {}]   ;;  %s1487_s5 = inlined_call_operand.vmem [shape: bf16[16,4], index: 5, kind: input, shape index: {}]   ;;  %s1488_s6 = inlined_call_operand.vmem [shape: f32[1,4], index: 6, kind: input, shape index: {}]   ;;  %s1489_s7 = inlined_call_operand.hbm [shape: f32[16,64], index: 7, kind: output, shape index: {}]  }
   0x1   :  { %14 = vsyncpa [#allocation3 + $0x1], 0  ;;  %s1270_s24 = smov 0   ;;  %s1272_s25 = smov 0  }
   0x2   :  { %s1274_s26 = smov 0   ;;  %s1276_s27 = smov 0  }
   0x3 LB: > { %s1291_s28 = sadd.s32 4294967295, %s1224_s27   ;;  %s1003_s29 = sadd.s32 4294967294, %s1224_s27   ;;  %s1224_s27 = sphi %s1276_s27, %s1495_s27   ;;  %s1220_s26 = sphi %s1274_s26, %s1494_s26   ;;  %s1216_s25 = sphi %s1272_s25, %s1493_s25   ;;  %s1212_s24 = sphi %s1270_s24, %s1492_s24  }
   0x4   : > { %s1295_s30 = sadd.s32 1, %s1224_s27   ;;  %s189_s8 = sadd.s32 1, %s1220_s26 }
   0x5   : > { %s186_s9 = ssub.s32 %s1224_s27, %s1295_s30  ;;  %p199_p0 = scmp.ne.s32.totalorder %s1220_s26, %s1216_s25 }
   0x6   : > { %p187_p1 = scmp.eq.s32.totalorder %s186_s9, 0  ;;  %p200_p2 = scmp.eq.s32.totalorder %s1291_s28, 1 }
   0x7   : > { %p205_p3 = scmp.ne.s32.totalorder %s1216_s25, %s1212_s24  ;;  %p206_p4 = scmp.eq.s32.totalorder %s1003_s29, 1 }
   0x8   : > { %s1306_s10 = scalar_select %p187_p1, %s1220_s26, %s189_s8  }
   0x9   : > { %p1308_p5 = por %p200_p2, %p199_p0  ;;  %p1312_p6 = por %p206_p4, %p205_p3 }
   0xa   : > { %p1006_p7 = scmp.ge.s32.totalorder %s1224_s27, 1  ;;  %p259_p8 = scmp.lt.s32.totalorder %s1224_s27, 3 }
   0xc   : > { %p260_p9 = pnand %p1006_p7, %p259_p8 }
   0xd   : > { %v1110_v0 = vld [vmem:[%s1485_s3] sm:$0xff] (!%p260_p9)   ;;  %s1009_s15 = sshll.u32 (!%p260_p9), %s1291_s28, 3  ;;  %v1111_v1 = vld [vmem:[%s1485_s3 + $0x8] sm:$0xff] (!%p260_p9)   ;;  %vm365_vm0 = vcmask (!%p260_p9), 261120   ;;  %p299_p11 = scmp.lt.s32.totalorder (!%p260_p9), %s1291_s28, 1  ;;  %v544_v7 = vlaneseq (!%p260_p9)  ;;  %v1226_v8 = vmov (!%p260_p9), 0  }
   0xe   : > { %263 = sbr.rel (%p260_p9) target bundleno = 822 (0x336), region = 48  ;;  %p304_p10 = scmp.lt.s32.totalorder (!%p260_p9), %s1009_s15, 15  ;;  %1044 = vmatprep.subr.bf16.mxu0 (!%p260_p9), %v1110_v0  ;;  %v1116_v6 = vld [vmem:[%s1487_s5] sm:$0xff] (!%p260_p9)   ;;  %1109 = vset.pattern.permute.xlu1 (!%p260_p9), %v1226_v8  ;;  %v1227_v9 = vmov (!%p260_p9), 1966171168   ;;  %vm466_vm9 = vcmask (!%p260_p9), 130048  }
   0xf   : > { %1045 = vmatpush3.bf16.msra.mxu0 (!%p260_p9), %v1110_v0  ;;  %1056 = vmatprep.subr.bf16.mxu1 (!%p260_p9), %v1116_v6  ;;  %v549_v10 = vunpack.c.l.s4 (!%p260_p9), %v1227_v9  ;;  %v545_v11 = vshrl.u32 (!%p260_p9), %v544_v7, 7  ;;  %v1012_v46 = vld [vmem:[%s1486_s4] ss:$0 sm:$0xff] (!%p260_p9)  ;;  %vm700_vm11 = vcmask (!%p260_p9), 31744   ;;  %s1228_s19 = smov (!%p260_p9), 32   ;;  %s296_s20 = sand.u32 (!%p260_p9), 1, %s1216_s25  }
  0x10   : > { %1046 = vmatprep.subr.bf16.mxu0 (!%p260_p9), %v1111_v1  ;;  %1057 = vmatpush3.bf16.msra.mxu1 (!%p260_p9), %v1116_v6  ;;  %s1030_s13 = sshll.u32 (!%p260_p9), %s1291_s28, 7 }
  0x11   : > { %1108 = vset.pattern.permute.xlu0 (!%p260_p9), %v1226_v8  ;;  %v550_v12 = vunpack.c.0.s8 (!%p260_p9), %v549_v10  ;;  %v598_v18 = vsub.s32 (!%p260_p9), 0, %v545_v11  ;;  %v1023_v10 = vld [vmem:[%s1488_s6] ss:$0 sm:$0xff] (!%p260_p9) }
  0x13   : > { %1047 = vmatpush3.bf16.msra.mxu0 (!%p260_p9), %v1111_v1  ;;  %v553_v13 = vsub.s32 (!%p260_p9), %v550_v12, %v545_v11 }
  0x15   : > { %s1497_s15 = smov (!%p304_p10, %s1009_s15), 15 }
  0x16   : > { %s1010_s18 = sshll.u32 %s1497_s15, 2 }
  0x17   : > { %s307_s21 = scalar_lea.vmem %s1483_s1, %s1010_s18  ;;  %s1439_s18 = scalar_lea.hbm %s1489_s7, %s1030_s13 }
  0x18   : > { %v1328_v2 = vld [vmem:[%s307_s21] sm:$0xff]   ;;  %v1330_v3 = vld [vmem:[%s307_s21 + $0x8] sm:$0xff]   ;;  %v1332_v4 = vld [vmem:[%s307_s21 + $0x10] sm:$0xff]   ;;  %s1349_s29 = scalar_select %p299_p11, %s1291_s28, 1 }
  0x19   : > { %1048 = vmatprep.mubr.msk.bf16.mxu0 %vm365_vm0, %v1328_v2  ;;  %v1340_v5 = vld [vmem:[%s307_s21 + $0x18] sm:$0xff]   ;;  %s1007_s21 = sshll.u32 %s296_s20, 3 }
  0x1a   : > { %1049 = vmatmul.mubr.msk.bf16.vlgmr.msra.gmra.mrb[0].mxu0 %vm365_vm0, %v1330_v3  ;;  %s1008_s8 = sshll.u32 %s1349_s29, 3  ;;  %s907_s29 = scalar_lea.sflag [#allocation3], %s296_s20 }
  0x1b   : > { %1052 = vmatprep.mubr.msk.bf16.mxu0 %vm365_vm0, %v1332_v4  ;;  %s312_s14 = scalar_lea.vmem %s1484_s2, %s1008_s8  ;;  %s302_s9 = scalar_lea.vmem %s1482_s0, %s1008_s8 }
  0x1c   : > { %v546_v14 = vld [vmem:[%s312_s14] sm:$0xff]  ;;  %s298_s14 = scalar_lea.vmem [#allocation2], %s1007_s21  ;;  %s1229_s8 = smov [#allocation2]  }
  0x1d   : > { %v554_v15 = vrot.slane %v546_v14, %v553_v13  ;;  %v547_v16 = vcombine.high %v546_v14, %v546_v14  ;;  %s920_s15 = sshll.u32 %s298_s14, 4  ;;  %s1441_s15 = int_to_ptr.vmem [resolvable:$true] %s920_s15 }
  0x1e   : > { %s1162_s28 = scalar_lea.vmem %s1441_s15, 128 }
  0x1f   : > { %v570_v17 = vrot.slane %v554_v15, %v553_v13  ;;  %v562_v19 = vcombine.high %v554_v15, %v554_v15  ;;  %v561_v20 = vrot.slane %v547_v16, %v553_v13  ;;  %p1163_p12 = scmp.ne.s32.totalorder %s1441_s15, %s1162_s28 }
  0x21   : > { %v592_v21 = vcombine.high %v570_v17, %v570_v17  ;;  %v599_v22 = vrot.slane %v570_v17, %v598_v18  ;;  %v584_v23 = vrot.slane %v562_v19, %v553_v13  ;;  %v563_v24 = vcombine.high %v561_v20, %v561_v20  ;;  %p1164_p13 = pnand %p1163_p12, %p1308_p5 }
  0x22   : > { %1053 = vmatmul.mubr.msk.bf16.gmra.mrb[4].mxu0 %vm365_vm0, %v1340_v5  ;;  %v577_v25 = vrot.slane %v561_v20, %v553_v13 }
  0x23   : > { %v607_v26 = vrot.slane %v592_v21, %v598_v18  ;;  %vm628_vm1 = vcmp.lt.s32.totalorder %v545_v11, %v599_v22  ;;  %v594_v27 = vcombine.high %v584_v23, %v584_v23  ;;  %v603_v28 = vrot.slane %v584_v23, %v598_v18  ;;  %p1165_p0 = pneg %p1164_p13 }
  0x24   : > { %v652_v29 = vsel %vm628_vm1, 1, %v1226_v8  ;;  %v591_v30 = vrot.slane %v563_v24, %v553_v13  ;;  %v615_v31 = vrot.slane %v577_v25, %v598_v18  ;;  %v593_v32 = vcombine.high %v577_v25, %v577_v25 }
  0x25   : > { %vm630_vm2 = vcmp.lt.s32.totalorder %v545_v11, %v607_v26  ;;  %661 = vperm.xlu0 %1108, %v652_v29   ;;  %v611_v33 = vrot.slane %v594_v27, %v598_v18  ;;  %vm629_vm3 = vcmp.lt.s32.totalorder %v545_v11, %v603_v28 }
  0x26   : > { %v654_v34 = vsel %vm630_vm2, 1, %v1226_v8  ;;  %v653_v35 = vsel %vm629_vm3, 1, %v1226_v8  ;;  %v619_v36 = vrot.slane %v591_v30, %v598_v18  ;;  %vm632_vm5 = vcmp.lt.s32.totalorder %v545_v11, %v615_v31 }
  0x27   : > { %667 = vperm.xlu1 %1109, %v654_v34   ;;  %vm631_vm4 = vcmp.lt.s32.totalorder %v545_v11, %v611_v33  ;;  %v595_v37 = vcombine.high %v591_v30, %v591_v30  ;;  %v623_v38 = vrot.slane %v593_v32, %v598_v18  ;;  %v656_v41 = vsel %vm632_vm5, 1, %v1226_v8 }
  0x28   : > { %v655_v39 = vsel %vm631_vm4, 1, %v1226_v8  ;;  %vm633_vm6 = vcmp.lt.s32.totalorder %v545_v11, %v619_v36  ;;  %vm886_vm4 = vcmask 1041409   ;;  %vm888_vm5 = vcmask 1042434  }
  0x29   : > { %664 = vperm.xlu0 %1108, %v653_v35   ;;  %v627_v40 = vrot.slane %v595_v37, %v598_v18  ;;  %vm634_vm7 = vcmp.lt.s32.totalorder %v545_v11, %v623_v38  ;;  %v657_v42 = vsel %vm633_vm6, 1, %v1226_v8  ;;  %vm890_vm6 = vcmask 1043459  }
  0x2a   : > { %v658_v43 = vsel %vm634_vm7, 1, %v1226_v8  ;;  %vm892_vm7 = vcmask 1044484  }
  0x2b   : > { %670 = vperm.xlu1 %1109, %v655_v39   ;;  %vm635_vm8 = vcmp.lt.s32.totalorder %v545_v11, %v627_v40 }
  0x2c   : > { %v659_v44 = vsel %vm635_vm8, 1, %v1226_v8  ;;  %vm894_vm8 = vcmask 1045509  }
  0x2d   : > { %673 = vperm.xlu0 %1108, %v656_v41  }
  0x2f   : > { %676 = vperm.xlu1 %1109, %v657_v42  }
  0x31   : > { %679 = vperm.xlu0 %1108, %v658_v43  }
  0x33   : > { %682 = vperm.xlu1 %1109, %v659_v44  }
  0xa4   : > { %v662_v17 = vpop.permute.xlu0 %661 }
  0xa5   : > { %vm684_vm12 = vcmp.eq.s32.totalorder %v662_v17, 1 }
  0xa6   : > { %v668_v14 = vpop.permute.xlu1 %667 }
  0xa7   : > { %vm686_vm10 = vcmp.eq.s32.totalorder %v668_v14, 1 }
  0xa8   : > { %v665_v27 = vpop.permute.xlu0 %664 }
  0xa9   : > { %vm685_vm13 = vcmp.eq.s32.totalorder %v665_v27, 1 }
  0xaa   : > { %v671_v25 = vpop.permute.xlu1 %670 }
  0xab   : > { %vm687_vm14 = vcmp.eq.s32.totalorder %v671_v25, 1 }
  0xac   : > { %v674_v40 = vpop.permute.xlu0 %673 }
  0xad   : > { %vm688_vm3 = vcmp.eq.s32.totalorder %v674_v40, 1 }
  0xae   : > { %v677_v38 = vpop.permute.xlu1 %676 }
  0xaf   : > { %vm689_vm15 = vcmp.eq.s32.totalorder %v677_v38, 1 }
  0xed   : > { %v1050_v45 = vpop.f32.mrb[0].mxu0 }
  0xee   : > { %v412_v47 = vpop.f32.mrb[1].mxu0  ;;  %v421_v49 = vadd.f32 %v1050_v45, %v1012_v46 }
  0xef   : > { %v1051_v48 = vpop.f32.mrb[2].mxu0  ;;  %v413_v52 = vadd.f32 %v1012_v46, %v412_v47 }
  0xf0   : > { %v424_v50 = vadd.f32 %v1051_v48, %v1012_v46  ;;  %v415_v51 = vpop.f32.mrb[3].mxu0 }
  0xf1   : > { %v416_v53 = vadd.f32 %v1012_v46, %v415_v51 }
  0xf2   : > { %v444_v54 = vpack.c.bf16 %v424_v50, %v421_v49 }
  0xf3   : > { %v443_v55 = vpack.c.bf16 %v416_v53, %v413_v52 }
  0xf5   : > { %1122 = vtanh.bf16 %v443_v55  ;;  %v1054_v56 = vpop.f32.mrb[4].mxu0 }
  0xf6   : > { %1124 = vtanh.bf16 %v444_v54  ;;  %v437_v57 = vadd.f32 %v1054_v56, %v1012_v46  ;;  %v428_v58 = vpop.f32.mrb[5].mxu0 }
  0xf7   : > { %v1055_v59 = vpop.f32.mrb[6].mxu0  ;;  %v429_v62 = vadd.f32 %v1012_v46, %v428_v58  ;;  %v680_v58 = vpop.permute.xlu0 %679 }
  0xf8   : > { %v440_v60 = vadd.f32 %v1055_v59, %v1012_v46  ;;  %v431_v61 = vpop.f32.mrb[7].mxu0  ;;  %vm690_vm2 = vcmp.eq.s32.totalorder %v680_v58, 1 }
  0xf9   : > { %v432_v63 = vadd.f32 %v1012_v46, %v431_v61 }
  0xfa   : > { %v446_v0 = vpack.c.bf16 %v440_v60, %v437_v57  ;;  %v683_v57 = vpop.permute.xlu1 %682 }
  0xfb   : > { %v445_v1 = vpack.c.bf16 %v432_v63, %v429_v62  ;;  %vm691_vm1 = vcmp.eq.s32.totalorder %v683_v57, 1 }
  0xfd   : > { %1126 = vtanh.bf16 %v445_v1 }
  0xfe   : > { %1128 = vtanh.bf16 %v446_v0 }
 0x100   : > { %v1123_v6 = vpop.eup %1122 }
 0x101   : > { %v1125_v7 = vpop.eup %1124  ;;  %1058 = vmatprep.mubr.msk.bf16.mxu1 %vm466_vm9, %v1123_v6 }
 0x102   : > { %1059 = vmatmul.mubr.msk.bf16.vlgmr.msra.gmra.mrb[0].mxu1 %vm466_vm9, %v1125_v7 }
 0x108   : > { %v1127_v8 = vpop.eup %1126 }
 0x109   : > { %v1129_v9 = vpop.eup %1128  ;;  %1062 = vmatprep.mubr.msk.bf16.mxu1 %vm466_vm9, %v1127_v8 }
 0x10a   : > { %1063 = vmatmul.mubr.msk.bf16.gmra.mrb[4].mxu1 %vm466_vm9, %v1129_v9  ;;  %vm896_vm9 = vcmask 1046534  }
 0x1d5   : > { %v1060_v11 = vpop.f32.mrb[0].mxu1 }
 0x1d6   : > { %v522_v12 = vadd.f32 %v1060_v11, %v1023_v10  ;;  %v513_v13 = vpop.f32.mrb[1].mxu1 }
 0x1d7   : > { %v514_v15 = vadd.f32 %v1023_v10, %v513_v13  ;;  %v1061_v16 = vpop.f32.mrb[2].mxu1 }
 0x1d8   : > { %v640_v18 = vmul.f32 1.442695, %v522_v12  ;;  %v525_v19 = vadd.f32 %v1061_v16, %v1023_v10  ;;  %v516_v20 = vpop.f32.mrb[3].mxu1 }
 0x1d9   : > { %v636_v21 = vmul.f32 1.442695, %v514_v15  ;;  %v517_v22 = vadd.f32 %v1023_v10, %v516_v20 }
 0x1da   : > { %1130 = vpow2.f32 %v640_v18  ;;  %v642_v23 = vmul.f32 1.442695, %v525_v19 }
 0x1db   : > { %1132 = vpow2.f32 %v636_v21  ;;  %v638_v24 = vmul.f32 1.442695, %v517_v22 }
 0x1dc   : > { %1134 = vpow2.f32 %v642_v23 }
 0x1dd   : > { %1136 = vpow2.f32 %v638_v24  ;;  %v1064_v26 = vpop.f32.mrb[4].mxu1 }
 0x1de   : > { %v538_v28 = vadd.f32 %v1064_v26, %v1023_v10  ;;  %v529_v29 = vpop.f32.mrb[5].mxu1 }
 0x1df   : > { %v530_v30 = vadd.f32 %v1023_v10, %v529_v29  ;;  %v1065_v31 = vpop.f32.mrb[6].mxu1 }
 0x1e0   : > { %v648_v32 = vmul.f32 1.442695, %v538_v28  ;;  %v541_v33 = vadd.f32 %v1065_v31, %v1023_v10  ;;  %v532_v34 = vpop.f32.mrb[7].mxu1 }
 0x1e1   : > { %v644_v35 = vmul.f32 1.442695, %v530_v30  ;;  %v533_v36 = vadd.f32 %v1023_v10, %v532_v34 }
 0x1e2   : > { %1138 = vpow2.f32 %v648_v32  ;;  %v650_v37 = vmul.f32 1.442695, %v541_v33 }
 0x1e3   : > { %1140 = vpow2.f32 %v644_v35  ;;  %v646_v39 = vmul.f32 1.442695, %v533_v36 }
 0x1e4   : > { %v1131_v41 = vpop.eup %1130  ;;  %1142 = vpow2.f32 %v650_v37 }
 0x1e5   : > { %v1133_v42 = vpop.eup %1132  ;;  %v1363_v43 = vsel %vm686_vm10, %v1131_v41, 0.0  ;;  %1144 = vpow2.f32 %v646_v39  ;;  %vm898_vm10 = vcmask 1047559  }
 0x1e6   : > { %v1135_v44 = vpop.eup %1134  ;;  %v715_v45 = vsel %vm700_vm11, %v1363_v43, 0.0  ;;  %v1367_v46 = vsel %vm684_vm12, %v1133_v42, 0.0 }
 0x1e7   : > { %v1137_v47 = vpop.eup %1136  ;;  %v716_v48 = vrot.slane %v715_v45, 4  ;;  %v701_v49 = vsel %vm700_vm11, %v1367_v46, 0.0  ;;  %v1371_v50 = vsel %vm687_vm14, %v1135_v44, 0.0 }
 0x1e8   : > { %v702_v51 = vrot.slane %v701_v49, 4  ;;  %v722_v52 = vsel %vm700_vm11, %v1371_v50, 0.0  ;;  %v1375_v53 = vsel %vm685_vm13, %v1137_v47, 0.0 }
 0x1e9   : > { %v717_v54 = vadd.f32 %v716_v48, %v715_v45  ;;  %v723_v55 = vrot.slane %v722_v52, 4  ;;  %v708_v56 = vsel %vm700_vm11, %v1375_v53, 0.0 }
 0x1ea   : > { %v703_v59 = vadd.f32 %v702_v51, %v701_v49  ;;  %v709_v60 = vrot.slane %v708_v56, 4 }
 0x1eb   : > { %v718_v61 = vrot.slane %v717_v54, 2  ;;  %v724_v62 = vadd.f32 %v723_v55, %v722_v52 }
 0x1ec   : > { %v1139_v63 = vpop.eup %1138  ;;  %v704_v0 = vrot.slane %v703_v59, 2  ;;  %v710_v1 = vadd.f32 %v709_v60, %v708_v56 }
 0x1ed   : > { %v1141_v6 = vpop.eup %1140  ;;  %v719_v7 = vadd.f32 %v718_v61, %v717_v54  ;;  %v725_v8 = vrot.slane %v724_v62, 2  ;;  %v1379_v9 = vsel %vm690_vm2, %v1139_v63, 0.0 }
 0x1ee   : > { %v1143_v10 = vpop.eup %1142  ;;  %v705_v11 = vadd.f32 %v704_v0, %v703_v59  ;;  %v711_v12 = vrot.slane %v710_v1, 2  ;;  %v1381_v13 = vsel %vm688_vm3, %v1141_v6, 0.0  ;;  %v743_v14 = vsel %vm700_vm11, %v1379_v9, 0.0 }
 0x1ef   : > { %v1145_v15 = vpop.eup %1144  ;;  %v720_v16 = vrot.slane %v719_v7, 1  ;;  %v726_v17 = vadd.f32 %v725_v8, %v724_v62  ;;  %v729_v18 = vsel %vm700_vm11, %v1381_v13, 0.0  ;;  %v1388_v19 = vsel %vm691_vm1, %v1143_v10, 0.0 }
 0x1f0   : > { %v706_v20 = vrot.slane %v705_v11, 1  ;;  %v712_v21 = vadd.f32 %v711_v12, %v710_v1  ;;  %v730_v22 = vrot.slane %v729_v18, 4  ;;  %v750_v23 = vsel %vm700_vm11, %v1388_v19, 0.0 }
 0x1f1   : > { %v721_v24 = vadd.f32 %v720_v16, %v719_v7  ;;  %v727_v25 = vrot.slane %v726_v17, 1  ;;  %v751_v26 = vrot.slane %v750_v23, 4  ;;  %v744_v27 = vrot.slane %v743_v14, 4 }
 0x1f2   : > { %v707_v28 = vadd.f32 %v706_v20, %v705_v11  ;;  %v713_v29 = vrot.slane %v712_v21, 1  ;;  %v731_v30 = vadd.f32 %v730_v22, %v729_v18  ;;  %v1393_v31 = vsel %vm689_vm15, %v1145_v15, 0.0 }
 0x1f3   : > { %v759_v32 = vmul.f32 4.0, %v721_v24  ;;  %v728_v33 = vadd.f32 %v727_v25, %v726_v17  ;;  %v752_v34 = vadd.f32 %v751_v26, %v750_v23  ;;  %v745_v35 = vadd.f32 %v744_v27, %v743_v14 }
 0x1f4   : > { %v757_v36 = vmul.f32 4.0, %v707_v28  ;;  %v714_v37 = vadd.f32 %v713_v29, %v712_v21  ;;  %v732_v39 = vrot.slane %v731_v30, 2  ;;  %v736_v40 = vsel %vm700_vm11, %v1393_v31, 0.0 }
 0x1f5   : > { %1146 = vrcp.f32 %v759_v32  ;;  %v760_v41 = vmul.f32 4.0, %v728_v33  ;;  %v753_v42 = vrot.slane %v752_v34, 2  ;;  %v746_v44 = vrot.slane %v745_v35, 2 }
 0x1f6   : > { %1148 = vrcp.f32 %v757_v36  ;;  %v758_v45 = vmul.f32 4.0, %v714_v37  ;;  %v733_v47 = vadd.f32 %v732_v39, %v731_v30  ;;  %v737_v38 = vrot.slane %v736_v40, 4 }
 0x1f7   : > { %v754_v48 = vadd.f32 %v753_v42, %v752_v34  ;;  %v747_v49 = vadd.f32 %v746_v44, %v745_v35  ;;  %v807_v29 = vunpack.c.l.bf16 %v1330_v3  ;;  %v805_v33 = vunpack.c.l.bf16 %v1328_v2 }
 0x1f8   : > { %1150 = vrcp.f32 %v758_v45  ;;  %v734_v51 = vrot.slane %v733_v47, 1  ;;  %v738_v52 = vadd.f32 %v737_v38, %v736_v40 }
 0x1f9   : > { %1152 = vrcp.f32 %v760_v41  ;;  %v755_v54 = vrot.slane %v754_v48, 1  ;;  %v748_v55 = vrot.slane %v747_v49, 1  ;;  %v809_v41 = vunpack.c.l.bf16 %v1332_v4 }
 0x1fa   : > { %v735_v56 = vadd.f32 %v734_v51, %v733_v47  ;;  %v739_v57 = vrot.slane %v738_v52, 2 }
 0x1fb   : > { %v756_v58 = vadd.f32 %v755_v54, %v754_v48  ;;  %v749_v59 = vadd.f32 %v748_v55, %v747_v49  ;;  %v811_v54 = vunpack.c.l.bf16 %v1340_v5 }
 0x1fc   : > { %v761_v60 = vmul.f32 4.0, %v735_v56  ;;  %v740_v61 = vadd.f32 %v739_v57, %v738_v52 }
 0x1fd   : > { %v763_v62 = vmul.f32 4.0, %v749_v59  ;;  %v764_v1 = vmul.f32 4.0, %v756_v58 }
 0x1fe   : > { %1154 = vrcp.f32 %v761_v60  ;;  %v741_v63 = vrot.slane %v740_v61, 1  ;;  %v810_v60 = vunpack.c.h.bf16 %v1332_v4 }
 0x1ff   : > { %v1147_v0 = vpop.eup %1146  ;;  %1156 = vrcp.f32 %v763_v62 }
 0x200   : > { %v1149_v6 = vpop.eup %1148  ;;  %v775_v7 = vmul.f32 %v1147_v0, %v1363_v43  ;;  %v742_v8 = vadd.f32 %v741_v63, %v740_v61  ;;  %1158 = vrcp.f32 %v764_v1 }
 0x201   : > { %v773_v12 = vmul.f32 %v1149_v6, %v1367_v46 }
 0x202   : > { %v1151_v10 = vpop.eup %1150  ;;  %v787_v11 = vsel %vm700_vm11, %v775_v7, 0.0  ;;  %v762_v14 = vmul.f32 4.0, %v742_v8 }
 0x203   : > { %v1153_v15 = vpop.eup %1152  ;;  %788 = vadd.xlane.f32.xlu0 %v787_v11  ;;  %v774_v16 = vmul.f32 %v1151_v10, %v1375_v53  ;;  %v781_v18 = vsel %vm700_vm11, %v773_v12, 0.0  ;;  %v812_v12 = vunpack.c.h.bf16 %v1340_v5 }
 0x204   : > { %1160 = vrcp.f32 %v762_v14  ;;  %v776_v43 = vmul.f32 %v1153_v15, %v1371_v50 }
 0x205   : > { %v784_v17 = vsel %vm700_vm11, %v774_v16, 0.0 }
 0x206   : > { %785 = vadd.xlane.f32.xlu1 %v784_v17  ;;  %v790_v46 = vsel %vm700_vm11, %v776_v43, 0.0 }
 0x207   : > { %782 = vadd.xlane.f32.xlu0 %v781_v18 }
 0x208   : > { %v1155_v20 = vpop.eup %1154 }
 0x209   : > { %v777_v21 = vmul.f32 %v1155_v20, %v1381_v13  ;;  %v1157_v22 = vpop.eup %1156 }
 0x20a   : > { %v779_v53 = vmul.f32 %v1157_v22, %v1379_v9  ;;  %v1159_v24 = vpop.eup %1158  ;;  %v806_v9 = vunpack.c.h.bf16 %v1328_v2 }
 0x20b   : > { %791 = vadd.xlane.f32.xlu0 %v790_v46  ;;  %v793_v23 = vsel %vm700_vm11, %v777_v21, 0.0  ;;  %v780_v13 = vmul.f32 %v1159_v24, %v1388_v19  ;;  %v808_v19 = vunpack.c.h.bf16 %v1330_v3 }
 0x20c   : > { %794 = vadd.xlane.f32.xlu1 %v793_v23  ;;  %v799_v27 = vsel %vm700_vm11, %v779_v53, 0.0 }
 0x20d   : > { %v802_v28 = vsel %vm700_vm11, %v780_v13, 0.0 }
 0x20e   : > { %v1161_v25 = vpop.eup %1160 }
 0x20f   : > { %v778_v26 = vmul.f32 %v1161_v25, %v1393_v31 }
 0x210   : > { %800 = vadd.xlane.f32.xlu1 %v799_v27 }
 0x211   : > { %v796_v50 = vsel %vm700_vm11, %v778_v26, 0.0  ;;  %vm904_vm11 = vcmask 523264  }
 0x212   : > { %797 = vadd.xlane.f32.xlu0 %v796_v50 }
 0x216   : > { %803 = vadd.xlane.f32.xlu0 %v802_v28 }
 0x290   : > { %v789_v30 = vpop.xlane.xlu0 %788 }
 0x291   : > { %v815_v32 = vmul.f32 %v807_v29, %v789_v30 }
 0x293   : > { %v835_v31 = vsel %vm365_vm0, %v815_v32, 0.0  ;;  %v786_v34 = vpop.xlane.xlu1 %785 }
 0x294   : > { %v836_v35 = vrot.slane %v835_v31, 4  ;;  %v814_v36 = vmul.f32 %v806_v9, %v786_v34  ;;  %v783_v37 = vpop.xlane.xlu0 %782 }
 0x295   : > { %v813_v39 = vmul.f32 %v805_v33, %v783_v37 }
 0x296   : > { %v828_v40 = vsel %vm365_vm0, %v814_v36, 0.0  ;;  %v837_v42 = vadd.f32 %v836_v35, %v835_v31 }
 0x297   : > { %v829_v44 = vrot.slane %v828_v40, 4  ;;  %v821_v45 = vsel %vm365_vm0, %v813_v39, 0.0 }
 0x298   : > { %v822_v47 = vrot.slane %v821_v45, 4  ;;  %v792_v38 = vpop.xlane.xlu0 %791  ;;  %v838_v55 = vrot.slane %v837_v42, 2 }
 0x299   : > { %v830_v2 = vadd.f32 %v829_v44, %v828_v40  ;;  %v816_v48 = vmul.f32 %v808_v19, %v792_v38  ;;  %v795_v49 = vpop.xlane.xlu1 %794 }
 0x29a   : > { %v823_v51 = vadd.f32 %v822_v47, %v821_v45  ;;  %v817_v52 = vmul.f32 %v809_v41, %v795_v49  ;;  %v839_v7 = vadd.f32 %v838_v55, %v837_v42 }
 0x29b   : > { %v831_v56 = vrot.slane %v830_v2, 2  ;;  %v842_v3 = vsel %vm365_vm0, %v816_v48, 0.0 }
 0x29c   : > { %v824_v57 = vrot.slane %v823_v51, 2  ;;  %v843_v58 = vrot.slane %v842_v3, 4  ;;  %v849_v59 = vsel %vm365_vm0, %v817_v52, 0.0  ;;  %v840_v25 = vrot.slane %v839_v7, 1  ;;  %v877_v52 = vld [vmem:[%s302_s9] sm:$0xff] }
 0x29d   : > { %v832_v61 = vadd.f32 %v831_v56, %v830_v2  ;;  %v850_v62 = vrot.slane %v849_v59, 4  ;;  %v801_v63 = vpop.xlane.xlu1 %800 }
 0x29e   : > { %v825_v0 = vadd.f32 %v824_v57, %v823_v51  ;;  %v844_v1 = vadd.f32 %v843_v58, %v842_v3  ;;  %v819_v6 = vmul.f32 %v811_v54, %v801_v63  ;;  %v841_v31 = vadd.f32 %v840_v25, %v839_v7 }
 0x29f   : > { %v833_v8 = vrot.slane %v832_v61, 1  ;;  %v851_v10 = vadd.f32 %v850_v62, %v849_v59  ;;  %v798_v11 = vpop.xlane.xlu0 %797 }
 0x2a0   : > { %v826_v14 = vrot.slane %v825_v0, 1  ;;  %v845_v15 = vrot.slane %v844_v1, 2  ;;  %v818_v16 = vmul.f32 %v810_v60, %v798_v11  ;;  %v863_v17 = vsel %vm365_vm0, %v819_v6, 0.0 }
 0x2a1   : > { %v852_v18 = vrot.slane %v851_v10, 2  ;;  %v864_v43 = vrot.slane %v863_v17, 4  ;;  %v834_v4 = vadd.f32 %v833_v8, %v832_v61 }
 0x2a2   : > { %v827_v20 = vadd.f32 %v826_v14, %v825_v0  ;;  %v846_v21 = vadd.f32 %v845_v15, %v844_v1  ;;  %v856_v22 = vsel %vm365_vm0, %v818_v16, 0.0 }
 0x2a3   : > { %v853_v46 = vadd.f32 %v852_v18, %v851_v10  ;;  %v857_v23 = vrot.slane %v856_v22, 4  ;;  %v865_v53 = vadd.f32 %v864_v43, %v863_v17  ;;  %v804_v24 = vpop.xlane.xlu0 %803 }
 0x2a4   : > { %v847_v26 = vrot.slane %v846_v21, 1  ;;  %v820_v5 = vmul.f32 %v812_v12, %v804_v24  ;;  %v887_v13 = vsel %vm886_vm4, %v834_v4, %v827_v20 }
 0x2a5   : > { %v858_v27 = vadd.f32 %v857_v23, %v856_v22  ;;  %v866_v50 = vrot.slane %v865_v53, 2  ;;  %v854_v28 = vrot.slane %v853_v46, 1  ;;  %v889_v39 = vsel %vm888_vm5, %v841_v31, %v887_v13 }
 0x2a6   : > { %v870_v29 = vsel %vm365_vm0, %v820_v5, 0.0  ;;  %v848_v30 = vadd.f32 %v847_v26, %v846_v21 }
 0x2a7   : > { %v859_v9 = vrot.slane %v858_v27, 2  ;;  %v867_v32 = vadd.f32 %v866_v50, %v865_v53  ;;  %v871_v33 = vrot.slane %v870_v29, 4  ;;  %v855_v36 = vadd.f32 %v854_v28, %v853_v46 }
 0x2a8   : > { %v891_v41 = vsel %vm890_vm6, %v848_v30, %v889_v39 }
 0x2a9   : > { %v860_v34 = vadd.f32 %v859_v9, %v858_v27  ;;  %v872_v35 = vadd.f32 %v871_v33, %v870_v29  ;;  %v868_v37 = vrot.slane %v867_v32, 1  ;;  %v893_v47 = vsel %vm892_vm7, %v855_v36, %v891_v41 }
 0x2ab   : > { %v861_v19 = vrot.slane %v860_v34, 1  ;;  %v873_v40 = vrot.slane %v872_v35, 2  ;;  %v869_v45 = vadd.f32 %v868_v37, %v867_v32 }
 0x2ad   : > { %v862_v42 = vadd.f32 %v861_v19, %v860_v34  ;;  %v874_v44 = vadd.f32 %v873_v40, %v872_v35 }
 0x2af   : > { %v875_v38 = vrot.slane %v874_v44, 1  ;;  %v895_v2 = vsel %vm894_vm8, %v862_v42, %v893_v47 }
 0x2b0   : > { %v897_v49 = vsel %vm896_vm9, %v869_v45, %v895_v2 }
 0x2b1   : > { %v876_v48 = vadd.f32 %v875_v38, %v874_v44 }
 0x2b3   : > { %v899_v51 = vsel %vm898_vm10, %v876_v48, %v897_v49 }
 0x2b4   : > { %900 = vrot.lane.b32.xlu1 %v899_v51, %s1228_s19  ;;  %s1166_s19 = sshll.u32 %s1229_s8, 4  ;;  %s1167_s19 = int_to_ptr.vmem [resolvable:$false] %s1166_s19 }
 0x2b5   : > { %s1168_s21 = scalar_lea.vmem %s1167_s19, 256  ;;  %p1169_p1 = scmp.lt.s32.totalorder %s1441_s15, %s1167_s19 }
 0x2b6   : > { %p1170_p2 = scmp.lt.s32.totalorder %s1168_s21, %s1162_s28 }
 0x2b8   : > { %p1171_p3 = por %p1170_p2, %p1169_p1 }
 0x2ba   : > { %p1172_p4 = pnand %p1171_p3, %p1165_p0 }
 0x326   : > { %v901_v54 = vpop.permute.xlu1 %900 }
 0x327   : > { %v903_v55 = vsel %vm365_vm0, %v877_v52, %v901_v54 }
 0x328   : > { %905 = vst.msk [vmem:[%s298_s14] sm:$0xff] %vm904_vm11, %v903_v55 }
 0x329   : > { %1175 = shalt.err (!%p1172_p4)
}
 0x32a   : > { %s1176_s20 = scalar_lea.hbm %s1439_s18, 128  ;;  %s1180_s9 = scalar_lea.hbm %s1489_s7, 256 }
 0x32b   : > { %p1177_p7 = scmp.ne.s32.totalorder %s1439_s18, %s1176_s20  ;;  %p1181_p10 = scmp.lt.u32.totalorder %s1439_s18, %s1489_s7 }
 0x32c   : > { %p1182_p11 = scmp.lt.u32.totalorder %s1180_s9, %s1176_s20  ;;  %p1184_p13 = scmp.lt.u32.totalorder %s1176_s20, %s1439_s18 }
 0x32d   : > { %p1178_p8 = pnand %p1177_p7, %p1308_p5 }
 0x32e   : > { %p1183_p12 = por %p1182_p11, %p1181_p10 }
 0x32f   : > { %p1179_p9 = pneg %p1178_p8 }
 0x330   : > { %p1185_p0 = por %p1184_p13, %p1183_p12 }
 0x332   : > { %p1186_p1 = pnand %p1185_p0, %p1179_p9 }
 0x334   : > { %1189 = shalt.err (!%p1186_p1)
}
 0x335   : > { %1066 = dma.vmem_to_hbm [thread:$0]  (%p1308_p5), %s1441_s15, 128, %s1439_s18, %s907_s29  }
 0x336 PF: > { %p1072_p2 = scmp.ge.s32.totalorder %s1224_s27, 2  ;;  %s932_s16 = sand.u32 1, %s1212_s24  }
 0x337   : > { %s933_s17 = scalar_lea.sflag [#allocation3], %s932_s16 }
 0x338   : > { %p1069_p3 = pnand %p1072_p2, %p1312_p6 }
 0x33a   : > { %1207 = dma.done.wait (!%p1069_p3), %s933_s17, 128  }
 0x33b   : > { %1209 = vsyncadd (!%p1069_p3), %s933_s17, 4294967168  ;;  %p17_p4 = scmp.ge.s32.totalorder %s1295_s30, 4   ;;  %s1492_s24 = smov %s1216_s25 }
 0x33c   : > { %s1493_s25 = smov %s1220_s26  ;;  %s1494_s26 = smov %s1306_s10 }
 0x33d   : > { %s1495_s27 = smov %s1295_s30  ;;  %19 = sbr.rel (!%p17_p4) target bundleno = 3 (0x3), region = 89 }
 0x344   :  { %938 = vsyncpa [#allocation3], 1 }
 0x345   :  { %940 = vsyncpa [#allocation3 + $0x1], 1 }

</bundles_post_ra>
